<compile_context>
chip_gen: v7x
topology: tpu7x:2x2x1
jax: 0.10.0
libtpu: 0.0.40
codegen_flags: <defaults>
</compile_context>

<pallas_src>
import functools

import jax
import jax.numpy as jnp
from jax.experimental import pallas as pl
from jax.experimental.pallas import tpu as pltpu


def _round_up(x, m):
    return ((x + m - 1) // m) * m


# ----------------------------------------------------------------------------
# Hoisted input projection (no sequential dependence): one big bf16 matmul over
# the whole sequence, f32 accumulate. Shared by the Pallas path and the pure-JAX
# reference so both see the identical drive U.
# ----------------------------------------------------------------------------
def _input_projection(x, w_in, b):
    """x: (T, B, I) f32, w_in: (D, I, H) bf16, b: (D, H) f32 -> (D, T, B, H) f32."""
    u = jnp.einsum("tbi,dih->dtbh", x.astype(jnp.bfloat16), w_in,
                   preferred_element_type=jnp.float32)
    return u + b[:, None, None, :].astype(jnp.float32)


# ----------------------------------------------------------------------------
# Pallas kernel: scan the ESN recurrence over one time block (T_BLK steps) for
# one direction.  Grid = (num_dirs, num_time_blocks); the hidden state lives in a
# VMEM scratch that persists across the (sequential) time-block axis.
# ----------------------------------------------------------------------------
def _esn_scan_kernel(u_ref, h0_ref, whh_ref, out_ref, hn_ref, h_scratch,
                     *, leak, t_blk, num_blocks, seq_len, num_dirs):
    tb = pl.program_id(1)                      # time-block index (processing order)

    @pl.when(tb == 0)
    def _():                                   # start of this direction's scan
        h_scratch[...] = h0_ref[0]

    w_hh = whh_ref[0]                          # (Hp, Hp) bf16, grid-invariant
    needs_mask = (num_blocks * t_blk != seq_len)   # static python bool

    if num_dirs == 2:
        d = pl.program_id(0)                   # 0 = forward scan, 1 = reversed scan
        data_tb = tb + d * (num_blocks - 1 - 2 * tb)
    else:
        d = None
        data_tb = tb

    def step(lt, h):
        # within-block data row: forward walks 0..t_blk-1, backward t_blk-1..0
        if num_dirs == 2:
            row = lt + d * (t_blk - 1 - 2 * lt)
        else:
            row = lt
        u_t = u_ref[0, row]                    # (Bp, Hp) f32: x_t @ W_in + b (hoisted)
        pre = jnp.dot(h.astype(jnp.bfloat16), w_hh,
                      preferred_element_type=jnp.float32) + u_t
        h_new = h + leak * (jnp.tanh(pre) - h)     # leaky update, f32 carry
        out_ref[0, row] = h_new.astype(out_ref.dtype)
        if needs_mask:
            # padded time steps must not perturb the carried state / h_n
            valid = (data_tb * t_blk + row) < seq_len
            h_new = jnp.where(valid, h_new, h)
        return h_new

    h_final = jax.lax.fori_loop(0, t_blk, step, h_scratch[...], unroll=True)
    h_scratch[...] = h_final

    @pl.when(tb == num_blocks - 1)             # h_n written once, at scan end
    def _():
        hn_ref[0] = h_final.astype(hn_ref.dtype)


def esn_scan(u, h0, w_hh, *, leak, seq_len, t_blk=8):
    """Scan the ESN recurrence over a padded, time-major sequence.

    u    : (D, Tp, Bp, Hp) f32   precomputed drive  x @ W_in + b
    h0   : (D, Bp, Hp)     f32
    w_hh : (D, Hp, Hp)     bf16
    returns out: (D, Tp, Bp, Hp) f32,  h_n: (D, Bp, Hp) f32
    """
    num_dirs, seq_pad, bp, hp = u.shape
    assert seq_pad % t_blk == 0 and bp % 8 == 0 and hp % 128 == 0
    num_blocks = seq_pad // t_blk

    kernel = functools.partial(
        _esn_scan_kernel, leak=float(leak), t_blk=t_blk,
        num_blocks=num_blocks, seq_len=seq_len, num_dirs=num_dirs)

    def _tblock(d, t, n=num_blocks):
        # forward direction walks time blocks left->right, backward right->left
        return d * (n - 1) + (1 - 2 * d) * t

    seq_spec = pl.BlockSpec((1, t_blk, bp, hp), lambda d, t: (d, _tblock(d, t), 0, 0))
    dir_spec = pl.BlockSpec((1, bp, hp), lambda d, t: (d, 0, 0))
    whh_spec = pl.BlockSpec((1, hp, hp), lambda d, t: (d, 0, 0))

    # Advisory cost hint for XLA scheduling around the per-layer calls.
    cost = pl.CostEstimate(
        flops=2 * num_dirs * seq_pad * bp * hp * hp
              + 4 * num_dirs * seq_pad * bp * hp,
        transcendentals=num_dirs * seq_pad * bp * hp,
        bytes_accessed=(2 * u.size + 2 * h0.size) * 4 + w_hh.size * 2,
    )

    # Explicit VMEM budget (important for v7x's 64 MiB VMEM with large hidden).
    vmem_est = (2 * 2 * t_blk * bp * hp * 4       # u + out blocks, double-buffered
                + 2 * hp * hp * 2                 # W_hh block (bf16)
                + 5 * bp * hp * 4)                # h0 + h_n blocks + h scratch
    vmem_limit = int(min(max(4 * vmem_est, 16 * 2 ** 20), 48 * 2 ** 20))

    out, h_n = pl.pallas_call(
        kernel,
        out_shape=(
            jax.ShapeDtypeStruct((num_dirs, seq_pad, bp, hp), jnp.float32),
            jax.ShapeDtypeStruct((num_dirs, bp, hp), jnp.float32),
        ),
        grid_spec=pltpu.PrefetchScalarGridSpec(
            num_scalar_prefetch=0,
            grid=(num_dirs, num_blocks),          # (direction, time-block)
            in_specs=[seq_spec, dir_spec, whh_spec],
            out_specs=[seq_spec, dir_spec],
            scratch_shapes=[pltpu.VMEM((bp, hp), jnp.float32)],
        ),
        compiler_params=pltpu.CompilerParams(
            # Directions are independent -> shard across TensorCores (v7x);
            # the time-block axis carries the sequential recurrence.
            dimension_semantics=("parallel", "arbitrary"),
            vmem_limit_bytes=vmem_limit,
        ),
        cost_estimate=cost,
    )(u, h0, w_hh)
    return out, h_n


# ----------------------------------------------------------------------------
# ESNBase-equivalent module (plain-JAX glue around the Pallas scan kernel).
# ----------------------------------------------------------------------------
class ESNBaseJax:
    """JAX/Pallas equivalent of ESNBase.forward with the canonical leaky ESN cell.

    The reservoir is fixed/untrained, so its weights are stored pre-quantized to
    bf16 and pre-padded to MXU-friendly shapes at construction time.
    """

    def __init__(self, input_size, reservoir_size, num_layers=1, dropout=0.0,
                 bidirectional=False, leak=1.0, seed=0, t_blk=8):
        self.input_size = input_size
        self.reservoir_size = reservoir_size
        self.num_layers = num_layers
        self.dropout = dropout
        self.bidirectional = bidirectional
        self.num_directions = 2 if bidirectional else 1
        self.leak = leak
        self.t_blk = t_blk
        self.hidden_pad = _round_up(reservoir_size, 128)   # lane-dense hidden
        # TODO(synk): inter-layer dropout (F.dropout for l>0), preserve_last_state and
        # forward_long_sequence / extract_last_states helpers are not implemented;
        # dropout=0.0 matches the reference module defaults.

        key = jax.random.PRNGKey(seed)
        H, Hp = reservoir_size, self.hidden_pad
        self.layers = []
        for layer in range(num_layers):
            layer_in = input_size if layer == 0 else reservoir_size * self.num_directions
            w_in_d, b_d, w_hh_d = [], [], []
            for _ in range(self.num_directions):
                key, k1, k2, k3 = jax.random.split(key, 4)
                w_in = jax.random.uniform(k1, (layer_in, H), minval=-1.0, maxval=1.0) * 0.5
                w_hh = jax.random.normal(k2, (H, H)) * (0.9 / jnp.sqrt(H))   # contractive
                b = jax.random.uniform(k3, (H,), minval=-0.1, maxval=0.1)
                w_in_d.append(w_in.astype(jnp.bfloat16))
                b_d.append(b.astype(jnp.float32))
                w_hh_p = jnp.zeros((Hp, Hp), jnp.bfloat16).at[:H, :H].set(
                    w_hh.astype(jnp.bfloat16))
                w_hh_d.append(w_hh_p)
            self.layers.append((jnp.stack(w_in_d), jnp.stack(b_d), jnp.stack(w_hh_d)))

    def forward(self, x, h_0=None):
        """x: (seq_len, batch, input_size) -> (output, h_n), matching ESNBase.forward."""
        seq_len, batch, _ = x.shape
        L, D = self.num_layers, self.num_directions
        H, Hp = self.reservoir_size, self.hidden_pad
        t_blk = self.t_blk
        seq_pad = _round_up(seq_len, t_blk)
        bp = _round_up(batch, 8)                           # sublane-dense batch

        if h_0 is None:
            h_0 = jnp.zeros((L * D, batch, H), jnp.float32)

        layer_input = x.astype(jnp.float32)
        h_n_list = []
        for l, (w_in, b, w_hh) in enumerate(self.layers):
            # Hoisted input projection for the whole sequence / both directions.
            u = _input_projection(layer_input, w_in, b)    # (D, T, B, H) f32
            u = jnp.pad(u, ((0, 0), (0, seq_pad - seq_len),
                            (0, bp - batch), (0, Hp - H)))
            h0_l = jnp.pad(h_0[D * l:D * (l + 1)].astype(jnp.float32),
                           ((0, 0), (0, bp - batch), (0, Hp - H)))
            out_p, hn_p = esn_scan(u, h0_l, w_hh, leak=self.leak,
                                   seq_len=seq_len, t_blk=t_blk)
            out = out_p[:, :seq_len, :batch, :H]           # (D, T, B, H)
            layer_input = jnp.concatenate([out[d] for d in range(D)], axis=-1)
            for d in range(D):
                h_n_list.append(hn_p[d, :batch, :H])
        return layer_input, jnp.stack(h_n_list)


# ----------------------------------------------------------------------------
# Pure-JAX reference (lax.scan) with identical cell numerics for correctness check.
# ----------------------------------------------------------------------------
def _ref_forward(model, x, h_0=None):
    seq_len, batch, _ = x.shape
    L, D, H = model.num_layers, model.num_directions, model.reservoir_size
    leak = model.leak
    if h_0 is None:
        h_0 = jnp.zeros((L * D, batch, H), jnp.float32)
    layer_input = x.astype(jnp.float32)
    h_n_list = []
    for l, (w_in, b, w_hh_p) in enumerate(model.layers):
        u = _input_projection(layer_input, w_in, b)        # identical to kernel path
        dir_outs = []
        for d in range(D):
            w = w_hh_p[d, :H, :H]                          # bf16, same values as kernel
            u_d = u[d] if d == 0 else u[d][::-1]

            def step(h, u_t, w=w):
                pre = jnp.dot(h.astype(jnp.bfloat16), w,
                              preferred_element_type=jnp.float32) + u_t
                h_new = h + leak * (jnp.tanh(pre) - h)
                return h_new, h_new

            h_n, outs = jax.lax.scan(step, h_0[D * l + d].astype(jnp.float32), u_d)
            if d == 1:
                outs = outs[::-1]
            dir_outs.append(outs)
            h_n_list.append(h_n)
        layer_input = jnp.concatenate(dir_outs, axis=-1)
    return layer_input, jnp.stack(h_n_list)


if __name__ == "__main__":
    root = jax.random.PRNGKey(0)
    k_x1, k_x2, k_h0 = jax.random.split(root, 3)

    # Tolerance note: the recurrent matmul feeds bf16 operands to the MXU in both
    # the kernel and the reference; a 1-ulp bf16 rounding difference on the carried
    # state can propagate to ~1e-3 in the outputs, while structural bugs give O(1).
    TOL = dict(atol=5e-3, rtol=1e-3)

    # --- 1) unidirectional, single layer ---------------------------------------
    seq_len, batch, input_size, hidden = 8, 2, 4, 32
    x = jax.random.normal(k_x1, (seq_len, batch, input_size), dtype=jnp.float32)
    model = ESNBaseJax(input_size, hidden, num_layers=1, bidirectional=False,
                       leak=1.0, seed=0)
    out, h_n = model.forward(x)
    out, h_n = jax.block_until_ready(out), jax.block_until_ready(h_n)
    assert out.shape == (seq_len, batch, model.num_directions * hidden)
    assert h_n.shape == (model.num_layers * model.num_directions, batch, hidden)

    ref_out, ref_h_n = _ref_forward(model, x)
    assert jnp.allclose(out, ref_out, **TOL)
    assert jnp.allclose(h_n, ref_h_n, **TOL)

    # --- 2) bidirectional, 2 layers, leaky, ragged seq/batch/hidden -------------
    seq2, batch2, in2, hid2 = 11, 3, 5, 20
    x2 = jax.random.normal(k_x2, (seq2, batch2, in2), dtype=jnp.float32)
    model2 = ESNBaseJax(in2, hid2, num_layers=2, bidirectional=True,
                        leak=0.7, seed=3)
    h0 = 0.1 * jax.random.normal(k_h0, (model2.num_layers * 2, batch2, hid2),
                                 dtype=jnp.float32)
    out2, hn2 = model2.forward(x2, h0)
    out2, hn2 = jax.block_until_ready(out2), jax.block_until_ready(hn2)
    assert out2.shape == (seq2, batch2, 2 * hid2)
    assert hn2.shape == (model2.num_layers * 2, batch2, hid2)

    ref_out2, ref_hn2 = _ref_forward(model2, x2, h0)
    assert jnp.allclose(out2, ref_out2, **TOL)
    assert jnp.allclose(hn2, ref_hn2, **TOL)

    print("KERNEL_OK")
</pallas_src>

<mosaic_0001>
module attributes {stable_mosaic.version = 11 : i64} {
  func.func @_esn_scan_kernel(%arg0: i32, %arg1: i32, %arg2: memref<1x8x8x128xf32, #tpu.memory_space<vmem>>, %arg3: memref<1x8x128xf32, #tpu.memory_space<vmem>>, %arg4: memref<1x128x128xbf16, #tpu.memory_space<vmem>>, %arg5: memref<1x8x8x128xf32, #tpu.memory_space<vmem>>, %arg6: memref<1x8x128xf32, #tpu.memory_space<vmem>>, %arg7: memref<8x128xf32, #tpu.memory_space<vmem>>) attributes {dimension_semantics = [#tpu.dimension_semantics<parallel>, #tpu.dimension_semantics<arbitrary>], iteration_bounds = array<i64: 1, 1>, scalar_prefetch = 0 : i64, scratch_operands = 1 : i64, tpu.core_type = #tpu.core_type<tc>, window_params = [{transform_indices = @transform_0, window_bounds = array<i64: 1, 8, 8, 128>}, {transform_indices = @transform_1, window_bounds = array<i64: 1, 8, 128>}, {transform_indices = @transform_2, window_bounds = array<i64: 1, 128, 128>}, {transform_indices = @transform_3, window_bounds = array<i64: 1, 8, 8, 128>}, {transform_indices = @transform_4, window_bounds = array<i64: 1, 8, 128>}]} {
    %c0_i32 = arith.constant 0 : i32
    %0 = arith.cmpi eq, %arg1, %c0_i32 : i32
    %1 = arith.extui %0 : i1 to i32
    %c0_i32_0 = arith.constant 0 : i32
    %2 = arith.cmpi ne, %1, %c0_i32_0 : i32
    scf.if %2 {
      %c0_73 = arith.constant 0 : index
      %c0_74 = arith.constant 0 : index
      %c0_75 = arith.constant 0 : index
      %130 = vector.load %arg3[%c0_73, %c0_74, %c0_75] : memref<1x8x128xf32, #tpu.memory_space<vmem>>, vector<1x8x128xf32>
      %131 = vector.shape_cast %130 : vector<1x8x128xf32> to vector<8x128xf32>
      %c0_76 = arith.constant 0 : index
      %c0_77 = arith.constant 0 : index
      %132 = vector.load %arg7[%c0_76, %c0_77] : memref<8x128xf32, #tpu.memory_space<vmem>>, vector<8x128xf32>
      tpu.vector_store %arg7[%c0_76, %c0_77], %131 {strides = array<i32>} : memref<8x128xf32, #tpu.memory_space<vmem>>, vector<8x128xf32>,
    } else {
    }
    %c0 = arith.constant 0 : index
    %c0_1 = arith.constant 0 : index
    %c0_2 = arith.constant 0 : index
    %3 = vector.load %arg4[%c0, %c0_1, %c0_2] : memref<1x128x128xbf16, #tpu.memory_space<vmem>>, vector<1x128x128xbf16>
    %4 = vector.shape_cast %3 : vector<1x128x128xbf16> to vector<128x128xbf16>
    %c0_3 = arith.constant 0 : index
    %c0_4 = arith.constant 0 : index
    %5 = vector.load %arg7[%c0_3, %c0_4] : memref<8x128xf32, #tpu.memory_space<vmem>>, vector<8x128xf32>
    %c0_i32_5 = arith.constant 0 : i32
    %c0_6 = arith.constant 0 : index
    %6 = arith.index_cast %c0_i32_5 : i32 to index
    %c0_7 = arith.constant 0 : index
    %c0_8 = arith.constant 0 : index
    %7 = vector.load %arg2[%c0_6, %6, %c0_7, %c0_8] : memref<1x8x8x128xf32, #tpu.memory_space<vmem>>, vector<1x1x8x128xf32>
    %8 = vector.shape_cast %7 : vector<1x1x8x128xf32> to vector<8x128xf32>
    %9 = arith.truncf %5 : vector<8x128xf32> to vector<8x128xbf16>
    %cst = arith.constant dense<0.000000e+00> : vector<8x128xf32>
    %10 = tpu.matmul %9, %4, %cst {dimension_numbers = #tpu.dot_dimension_numbers<[1], [0], [0], [1], [0, 0, 1, 1], [], []>} : vector<8x128xbf16>, vector<128x128xbf16>, vector<8x128xf32> -> vector<8x128xf32>
    %11 = arith.addf %10, %8 : vector<8x128xf32>
    %12 = math.tanh %11 : vector<8x128xf32>
    %13 = arith.subf %12, %5 : vector<8x128xf32>
    %cst_9 = arith.constant 1.000000e+00 : f32
    %14 = vector.broadcast %cst_9 : f32 to vector<8x128xf32>
    %15 = arith.mulf %14, %13 : vector<8x128xf32>
    %16 = arith.addf %5, %15 : vector<8x128xf32>
    %c0_10 = arith.constant 0 : index
    %17 = arith.index_cast %c0_i32_5 : i32 to index
    %c0_11 = arith.constant 0 : index
    %c0_12 = arith.constant 0 : index
    %18 = vector.load %arg5[%c0_10, %17, %c0_11, %c0_12] : memref<1x8x8x128xf32, #tpu.memory_space<vmem>>, vector<1x1x8x128xf32>
    %19 = vector.shape_cast %18 : vector<1x1x8x128xf32> to vector<8x128xf32>
    %20 = vector.shape_cast %16 : vector<8x128xf32> to vector<1x1x8x128xf32>
    tpu.vector_store %arg5[%c0_10, %17, %c0_11, %c0_12], %20 {strides = array<i32>} : memref<1x8x8x128xf32, #tpu.memory_space<vmem>>, vector<1x1x8x128xf32>,
    %c1_i32 = arith.constant 1 : i32
    %c0_13 = arith.constant 0 : index
    %21 = arith.index_cast %c1_i32 : i32 to index
    %c0_14 = arith.constant 0 : index
    %c0_15 = arith.constant 0 : index
    %22 = vector.load %arg2[%c0_13, %21, %c0_14, %c0_15] : memref<1x8x8x128xf32, #tpu.memory_space<vmem>>, vector<1x1x8x128xf32>
    %23 = vector.shape_cast %22 : vector<1x1x8x128xf32> to vector<8x128xf32>
    %24 = arith.truncf %16 : vector<8x128xf32> to vector<8x128xbf16>
    %cst_16 = arith.constant dense<0.000000e+00> : vector<8x128xf32>
    %25 = tpu.matmul %24, %4, %cst_16 {dimension_numbers = #tpu.dot_dimension_numbers<[1], [0], [0], [1], [0, 0, 1, 1], [], []>} : vector<8x128xbf16>, vector<128x128xbf16>, vector<8x128xf32> -> vector<8x128xf32>
    %26 = arith.addf %25, %23 : vector<8x128xf32>
    %27 = math.tanh %26 : vector<8x128xf32>
    %28 = arith.subf %27, %16 : vector<8x128xf32>
    %cst_17 = arith.constant 1.000000e+00 : f32
    %29 = vector.broadcast %cst_17 : f32 to vector<8x128xf32>
    %30 = arith.mulf %29, %28 : vector<8x128xf32>
    %31 = arith.addf %16, %30 : vector<8x128xf32>
    %c0_18 = arith.constant 0 : index
    %32 = arith.index_cast %c1_i32 : i32 to index
    %c0_19 = arith.constant 0 : index
    %c0_20 = arith.constant 0 : index
    %33 = vector.load %arg5[%c0_18, %32, %c0_19, %c0_20] : memref<1x8x8x128xf32, #tpu.memory_space<vmem>>, vector<1x1x8x128xf32>
    %34 = vector.shape_cast %33 : vector<1x1x8x128xf32> to vector<8x128xf32>
    %35 = vector.shape_cast %31 : vector<8x128xf32> to vector<1x1x8x128xf32>
    tpu.vector_store %arg5[%c0_18, %32, %c0_19, %c0_20], %35 {strides = array<i32>} : memref<1x8x8x128xf32, #tpu.memory_space<vmem>>, vector<1x1x8x128xf32>,
    %c2_i32 = arith.constant 2 : i32
    %c0_21 = arith.constant 0 : index
    %36 = arith.index_cast %c2_i32 : i32 to index
    %c0_22 = arith.constant 0 : index
    %c0_23 = arith.constant 0 : index
    %37 = vector.load %arg2[%c0_21, %36, %c0_22, %c0_23] : memref<1x8x8x128xf32, #tpu.memory_space<vmem>>, vector<1x1x8x128xf32>
    %38 = vector.shape_cast %37 : vector<1x1x8x128xf32> to vector<8x128xf32>
    %39 = arith.truncf %31 : vector<8x128xf32> to vector<8x128xbf16>
    %cst_24 = arith.constant dense<0.000000e+00> : vector<8x128xf32>
    %40 = tpu.matmul %39, %4, %cst_24 {dimension_numbers = #tpu.dot_dimension_numbers<[1], [0], [0], [1], [0, 0, 1, 1], [], []>} : vector<8x128xbf16>, vector<128x128xbf16>, vector<8x128xf32> -> vector<8x128xf32>
    %41 = arith.addf %40, %38 : vector<8x128xf32>
    %42 = math.tanh %41 : vector<8x128xf32>
    %43 = arith.subf %42, %31 : vector<8x128xf32>
    %cst_25 = arith.constant 1.000000e+00 : f32
    %44 = vector.broadcast %cst_25 : f32 to vector<8x128xf32>
    %45 = arith.mulf %44, %43 : vector<8x128xf32>
    %46 = arith.addf %31, %45 : vector<8x128xf32>
    %c0_26 = arith.constant 0 : index
    %47 = arith.index_cast %c2_i32 : i32 to index
    %c0_27 = arith.constant 0 : index
    %c0_28 = arith.constant 0 : index
    %48 = vector.load %arg5[%c0_26, %47, %c0_27, %c0_28] : memref<1x8x8x128xf32, #tpu.memory_space<vmem>>, vector<1x1x8x128xf32>
    %49 = vector.shape_cast %48 : vector<1x1x8x128xf32> to vector<8x128xf32>
    %50 = vector.shape_cast %46 : vector<8x128xf32> to vector<1x1x8x128xf32>
    tpu.vector_store %arg5[%c0_26, %47, %c0_27, %c0_28], %50 {strides = array<i32>} : memref<1x8x8x128xf32, #tpu.memory_space<vmem>>, vector<1x1x8x128xf32>,
    %c3_i32 = arith.constant 3 : i32
    %c0_29 = arith.constant 0 : index
    %51 = arith.index_cast %c3_i32 : i32 to index
    %c0_30 = arith.constant 0 : index
    %c0_31 = arith.constant 0 : index
    %52 = vector.load %arg2[%c0_29, %51, %c0_30, %c0_31] : memref<1x8x8x128xf32, #tpu.memory_space<vmem>>, vector<1x1x8x128xf32>
    %53 = vector.shape_cast %52 : vector<1x1x8x128xf32> to vector<8x128xf32>
    %54 = arith.truncf %46 : vector<8x128xf32> to vector<8x128xbf16>
    %cst_32 = arith.constant dense<0.000000e+00> : vector<8x128xf32>
    %55 = tpu.matmul %54, %4, %cst_32 {dimension_numbers = #tpu.dot_dimension_numbers<[1], [0], [0], [1], [0, 0, 1, 1], [], []>} : vector<8x128xbf16>, vector<128x128xbf16>, vector<8x128xf32> -> vector<8x128xf32>
    %56 = arith.addf %55, %53 : vector<8x128xf32>
    %57 = math.tanh %56 : vector<8x128xf32>
    %58 = arith.subf %57, %46 : vector<8x128xf32>
    %cst_33 = arith.constant 1.000000e+00 : f32
    %59 = vector.broadcast %cst_33 : f32 to vector<8x128xf32>
    %60 = arith.mulf %59, %58 : vector<8x128xf32>
    %61 = arith.addf %46, %60 : vector<8x128xf32>
    %c0_34 = arith.constant 0 : index
    %62 = arith.index_cast %c3_i32 : i32 to index
    %c0_35 = arith.constant 0 : index
    %c0_36 = arith.constant 0 : index
    %63 = vector.load %arg5[%c0_34, %62, %c0_35, %c0_36] : memref<1x8x8x128xf32, #tpu.memory_space<vmem>>, vector<1x1x8x128xf32>
    %64 = vector.shape_cast %63 : vector<1x1x8x128xf32> to vector<8x128xf32>
    %65 = vector.shape_cast %61 : vector<8x128xf32> to vector<1x1x8x128xf32>
    tpu.vector_store %arg5[%c0_34, %62, %c0_35, %c0_36], %65 {strides = array<i32>} : memref<1x8x8x128xf32, #tpu.memory_space<vmem>>, vector<1x1x8x128xf32>,
    %c4_i32 = arith.constant 4 : i32
    %c0_37 = arith.constant 0 : index
    %66 = arith.index_cast %c4_i32 : i32 to index
    %c0_38 = arith.constant 0 : index
    %c0_39 = arith.constant 0 : index
    %67 = vector.load %arg2[%c0_37, %66, %c0_38, %c0_39] : memref<1x8x8x128xf32, #tpu.memory_space<vmem>>, vector<1x1x8x128xf32>
    %68 = vector.shape_cast %67 : vector<1x1x8x128xf32> to vector<8x128xf32>
    %69 = arith.truncf %61 : vector<8x128xf32> to vector<8x128xbf16>
    %cst_40 = arith.constant dense<0.000000e+00> : vector<8x128xf32>
    %70 = tpu.matmul %69, %4, %cst_40 {dimension_numbers = #tpu.dot_dimension_numbers<[1], [0], [0], [1], [0, 0, 1, 1], [], []>} : vector<8x128xbf16>, vector<128x128xbf16>, vector<8x128xf32> -> vector<8x128xf32>
    %71 = arith.addf %70, %68 : vector<8x128xf32>
    %72 = math.tanh %71 : vector<8x128xf32>
    %73 = arith.subf %72, %61 : vector<8x128xf32>
    %cst_41 = arith.constant 1.000000e+00 : f32
    %74 = vector.broadcast %cst_41 : f32 to vector<8x128xf32>
    %75 = arith.mulf %74, %73 : vector<8x128xf32>
    %76 = arith.addf %61, %75 : vector<8x128xf32>
    %c0_42 = arith.constant 0 : index
    %77 = arith.index_cast %c4_i32 : i32 to index
    %c0_43 = arith.constant 0 : index
    %c0_44 = arith.constant 0 : index
    %78 = vector.load %arg5[%c0_42, %77, %c0_43, %c0_44] : memref<1x8x8x128xf32, #tpu.memory_space<vmem>>, vector<1x1x8x128xf32>
    %79 = vector.shape_cast %78 : vector<1x1x8x128xf32> to vector<8x128xf32>
    %80 = vector.shape_cast %76 : vector<8x128xf32> to vector<1x1x8x128xf32>
    tpu.vector_store %arg5[%c0_42, %77, %c0_43, %c0_44], %80 {strides = array<i32>} : memref<1x8x8x128xf32, #tpu.memory_space<vmem>>, vector<1x1x8x128xf32>,
    %c5_i32 = arith.constant 5 : i32
    %c0_45 = arith.constant 0 : index
    %81 = arith.index_cast %c5_i32 : i32 to index
    %c0_46 = arith.constant 0 : index
    %c0_47 = arith.constant 0 : index
    %82 = vector.load %arg2[%c0_45, %81, %c0_46, %c0_47] : memref<1x8x8x128xf32, #tpu.memory_space<vmem>>, vector<1x1x8x128xf32>
    %83 = vector.shape_cast %82 : vector<1x1x8x128xf32> to vector<8x128xf32>
    %84 = arith.truncf %76 : vector<8x128xf32> to vector<8x128xbf16>
    %cst_48 = arith.constant dense<0.000000e+00> : vector<8x128xf32>
    %85 = tpu.matmul %84, %4, %cst_48 {dimension_numbers = #tpu.dot_dimension_numbers<[1], [0], [0], [1], [0, 0, 1, 1], [], []>} : vector<8x128xbf16>, vector<128x128xbf16>, vector<8x128xf32> -> vector<8x128xf32>
    %86 = arith.addf %85, %83 : vector<8x128xf32>
    %87 = math.tanh %86 : vector<8x128xf32>
    %88 = arith.subf %87, %76 : vector<8x128xf32>
    %cst_49 = arith.constant 1.000000e+00 : f32
    %89 = vector.broadcast %cst_49 : f32 to vector<8x128xf32>
    %90 = arith.mulf %89, %88 : vector<8x128xf32>
    %91 = arith.addf %76, %90 : vector<8x128xf32>
    %c0_50 = arith.constant 0 : index
    %92 = arith.index_cast %c5_i32 : i32 to index
    %c0_51 = arith.constant 0 : index
    %c0_52 = arith.constant 0 : index
    %93 = vector.load %arg5[%c0_50, %92, %c0_51, %c0_52] : memref<1x8x8x128xf32, #tpu.memory_space<vmem>>, vector<1x1x8x128xf32>
    %94 = vector.shape_cast %93 : vector<1x1x8x128xf32> to vector<8x128xf32>
    %95 = vector.shape_cast %91 : vector<8x128xf32> to vector<1x1x8x128xf32>
    tpu.vector_store %arg5[%c0_50, %92, %c0_51, %c0_52], %95 {strides = array<i32>} : memref<1x8x8x128xf32, #tpu.memory_space<vmem>>, vector<1x1x8x128xf32>,
    %c6_i32 = arith.constant 6 : i32
    %c0_53 = arith.constant 0 : index
    %96 = arith.index_cast %c6_i32 : i32 to index
    %c0_54 = arith.constant 0 : index
    %c0_55 = arith.constant 0 : index
    %97 = vector.load %arg2[%c0_53, %96, %c0_54, %c0_55] : memref<1x8x8x128xf32, #tpu.memory_space<vmem>>, vector<1x1x8x128xf32>
    %98 = vector.shape_cast %97 : vector<1x1x8x128xf32> to vector<8x128xf32>
    %99 = arith.truncf %91 : vector<8x128xf32> to vector<8x128xbf16>
    %cst_56 = arith.constant dense<0.000000e+00> : vector<8x128xf32>
    %100 = tpu.matmul %99, %4, %cst_56 {dimension_numbers = #tpu.dot_dimension_numbers<[1], [0], [0], [1], [0, 0, 1, 1], [], []>} : vector<8x128xbf16>, vector<128x128xbf16>, vector<8x128xf32> -> vector<8x128xf32>
    %101 = arith.addf %100, %98 : vector<8x128xf32>
    %102 = math.tanh %101 : vector<8x128xf32>
    %103 = arith.subf %102, %91 : vector<8x128xf32>
    %cst_57 = arith.constant 1.000000e+00 : f32
    %104 = vector.broadcast %cst_57 : f32 to vector<8x128xf32>
    %105 = arith.mulf %104, %103 : vector<8x128xf32>
    %106 = arith.addf %91, %105 : vector<8x128xf32>
    %c0_58 = arith.constant 0 : index
    %107 = arith.index_cast %c6_i32 : i32 to index
    %c0_59 = arith.constant 0 : index
    %c0_60 = arith.constant 0 : index
    %108 = vector.load %arg5[%c0_58, %107, %c0_59, %c0_60] : memref<1x8x8x128xf32, #tpu.memory_space<vmem>>, vector<1x1x8x128xf32>
    %109 = vector.shape_cast %108 : vector<1x1x8x128xf32> to vector<8x128xf32>
    %110 = vector.shape_cast %106 : vector<8x128xf32> to vector<1x1x8x128xf32>
    tpu.vector_store %arg5[%c0_58, %107, %c0_59, %c0_60], %110 {strides = array<i32>} : memref<1x8x8x128xf32, #tpu.memory_space<vmem>>, vector<1x1x8x128xf32>,
    %c7_i32 = arith.constant 7 : i32
    %c0_61 = arith.constant 0 : index
    %111 = arith.index_cast %c7_i32 : i32 to index
    %c0_62 = arith.constant 0 : index
    %c0_63 = arith.constant 0 : index
    %112 = vector.load %arg2[%c0_61, %111, %c0_62, %c0_63] : memref<1x8x8x128xf32, #tpu.memory_space<vmem>>, vector<1x1x8x128xf32>
    %113 = vector.shape_cast %112 : vector<1x1x8x128xf32> to vector<8x128xf32>
    %114 = arith.truncf %106 : vector<8x128xf32> to vector<8x128xbf16>
    %cst_64 = arith.constant dense<0.000000e+00> : vector<8x128xf32>
    %115 = tpu.matmul %114, %4, %cst_64 {dimension_numbers = #tpu.dot_dimension_numbers<[1], [0], [0], [1], [0, 0, 1, 1], [], []>} : vector<8x128xbf16>, vector<128x128xbf16>, vector<8x128xf32> -> vector<8x128xf32>
    %116 = arith.addf %115, %113 : vector<8x128xf32>
    %117 = math.tanh %116 : vector<8x128xf32>
    %118 = arith.subf %117, %106 : vector<8x128xf32>
    %cst_65 = arith.constant 1.000000e+00 : f32
    %119 = vector.broadcast %cst_65 : f32 to vector<8x128xf32>
    %120 = arith.mulf %119, %118 : vector<8x128xf32>
    %121 = arith.addf %106, %120 : vector<8x128xf32>
    %c0_66 = arith.constant 0 : index
    %122 = arith.index_cast %c7_i32 : i32 to index
    %c0_67 = arith.constant 0 : index
    %c0_68 = arith.constant 0 : index
    %123 = vector.load %arg5[%c0_66, %122, %c0_67, %c0_68] : memref<1x8x8x128xf32, #tpu.memory_space<vmem>>, vector<1x1x8x128xf32>
    %124 = vector.shape_cast %123 : vector<1x1x8x128xf32> to vector<8x128xf32>
    %125 = vector.shape_cast %121 : vector<8x128xf32> to vector<1x1x8x128xf32>
    tpu.vector_store %arg5[%c0_66, %122, %c0_67, %c0_68], %125 {strides = array<i32>} : memref<1x8x8x128xf32, #tpu.memory_space<vmem>>, vector<1x1x8x128xf32>,
    %c8_i32 = arith.constant 8 : i32
    %c0_69 = arith.constant 0 : index
    %c0_70 = arith.constant 0 : index
    %126 = vector.load %arg7[%c0_69, %c0_70] : memref<8x128xf32, #tpu.memory_space<vmem>>, vector<8x128xf32>
    tpu.vector_store %arg7[%c0_69, %c0_70], %121 {strides = array<i32>} : memref<8x128xf32, #tpu.memory_space<vmem>>, vector<8x128xf32>,
    %c0_i32_71 = arith.constant 0 : i32
    %127 = arith.cmpi eq, %arg1, %c0_i32_71 : i32
    %128 = arith.extui %127 : i1 to i32
    %c0_i32_72 = arith.constant 0 : i32
    %129 = arith.cmpi ne, %128, %c0_i32_72 : i32
    scf.if %129 {
      %c0_73 = arith.constant 0 : index
      %c0_74 = arith.constant 0 : index
      %c0_75 = arith.constant 0 : index
      %130 = vector.load %arg6[%c0_73, %c0_74, %c0_75] : memref<1x8x128xf32, #tpu.memory_space<vmem>>, vector<1x8x128xf32>
      %131 = vector.shape_cast %130 : vector<1x8x128xf32> to vector<8x128xf32>
      %132 = vector.shape_cast %121 : vector<8x128xf32> to vector<1x8x128xf32>
      tpu.vector_store %arg6[%c0_73, %c0_74, %c0_75], %132 {strides = array<i32>} : memref<1x8x128xf32, #tpu.memory_space<vmem>>, vector<1x8x128xf32>,
    } else {
    }
    return
  }
  func.func @transform_0(%arg0: i32, %arg1: i32) -> (i32, i32, i32, i32) {
    %c0_i32 = arith.constant 0 : i32
    %0 = arith.muli %arg0, %c0_i32 : i32
    %c2_i32 = arith.constant 2 : i32
    %1 = arith.muli %c2_i32, %arg0 : i32
    %c1_i32 = arith.constant 1 : i32
    %2 = arith.subi %c1_i32, %1 : i32
    %3 = arith.muli %2, %arg1 : i32
    %4 = arith.addi %0, %3 : i32
    %c0_i32_0 = arith.constant 0 : i32
    %c0_i32_1 = arith.constant 0 : i32
    %c0_i32_2 = arith.constant 0 : i32
    return %arg0, %4, %c0_i32_0, %c0_i32_1 : i32, i32, i32, i32
  }
  func.func @transform_1(%arg0: i32, %arg1: i32) -> (i32, i32, i32) {
    %c0_i32 = arith.constant 0 : i32
    %c0_i32_0 = arith.constant 0 : i32
    %c0_i32_1 = arith.constant 0 : i32
    return %arg0, %c0_i32, %c0_i32_0 : i32, i32, i32
  }
  func.func @transform_2(%arg0: i32, %arg1: i32) -> (i32, i32, i32) {
    %c0_i32 = arith.constant 0 : i32
    %c0_i32_0 = arith.constant 0 : i32
    %c0_i32_1 = arith.constant 0 : i32
    return %arg0, %c0_i32, %c0_i32_0 : i32, i32, i32
  }
  func.func @transform_3(%arg0: i32, %arg1: i32) -> (i32, i32, i32, i32) {
    %c0_i32 = arith.constant 0 : i32
    %0 = arith.muli %arg0, %c0_i32 : i32
    %c2_i32 = arith.constant 2 : i32
    %1 = arith.muli %c2_i32, %arg0 : i32
    %c1_i32 = arith.constant 1 : i32
    %2 = arith.subi %c1_i32, %1 : i32
    %3 = arith.muli %2, %arg1 : i32
    %4 = arith.addi %0, %3 : i32
    %c0_i32_0 = arith.constant 0 : i32
    %c0_i32_1 = arith.constant 0 : i32
    %c0_i32_2 = arith.constant 0 : i32
    return %arg0, %4, %c0_i32_0, %c0_i32_1 : i32, i32, i32, i32
  }
  func.func @transform_4(%arg0: i32, %arg1: i32) -> (i32, i32, i32) {
    %c0_i32 = arith.constant 0 : i32
    %c0_i32_0 = arith.constant 0 : i32
    %c0_i32_1 = arith.constant 0 : i32
    return %arg0, %c0_i32, %c0_i32_0 : i32, i32, i32
  }
}

</mosaic_0001>

<bundles_post_ra>
// kernel: tpu_custom_call.1
= control target key start
LH: loop header
LB: loop body
LE: loop exit
PB: predicated region body
PF: predicated region fallthrough
CT: control target
= control target key end

     0   :  { %10 = vsyncpa [#allocation4], 0  ;;  %s1234_s0 = inlined_call_operand.hbm [shape: f32[1,8,8,128], index: 0, kind: input, shape index: {}]   ;;  %s1235_s1 = inlined_call_operand.hbm [shape: f32[1,8,128], index: 1, kind: input, shape index: {}]   ;;  %s1236_s2 = inlined_call_operand.hbm [shape: bf16[1,128,128], index: 2, kind: input, shape index: {}]   ;;  %s1237_s3 = inlined_call_operand.hbm [shape: f32[1,8,8,128], index: 3, kind: output, shape index: {0}]   ;;  %s1238_s4 = inlined_call_operand.hbm [shape: f32[1,8,128], index: 4, kind: output, shape index: {1}]  }
   0x1   :  { %11 = vsyncpa [#allocation7], 0 }
   0x2   :  { %12 = vsyncpa [#allocation5], 0 }
   0x3   :  { %13 = vsyncpa [#allocation11], 0  ;;  %s965_s15 = smov [#allocation6]   ;;  %s966_s17 = smov [#allocation3]  }
   0x4   :  { %s38_s16 = sshll.u32 %s965_s15, 4  ;;  %s25_s18 = sshll.u32 %s966_s17, 4  ;;  %s39_s16 = int_to_ptr.vmem [resolvable:$true] %s38_s16  ;;  %s1001_s18 = int_to_ptr.vmem [resolvable:$true] %s25_s18 }
   0x5   :  { %s847_s21 = scalar_lea.hbm %s1235_s1, 128 }
   0x6   :  { %p848_p0 = scmp.ne.s32.totalorder %s1235_s1, %s847_s21  ;;  %p851_p1 = scmp.lt.u32.totalorder %s847_s21, %s1235_s1 }
   0x8   :  { %p853_p2 = pnand %p851_p1, %p848_p0 }
   0xa   :  { %856 = shalt.err (!%p853_p2)
}
   0xb   :  { %s857_s26 = scalar_lea.vmem %s39_s16, 128  ;;  %p862_p4 = scmp.lt.s32.totalorder %s39_s16, %s39_s16 }
   0xc   :  { %p858_p3 = scmp.ne.s32.totalorder %s39_s16, %s857_s26  ;;  %p863_p5 = scmp.lt.s32.totalorder %s857_s26, %s857_s26 }
   0xe   :  { %p864_p6 = por %p863_p5, %p862_p4 }
  0x10   :  { %p865_p7 = pnand %p864_p6, %p858_p3 }
  0x12   :  { %868 = shalt.err (!%p865_p7)
}
  0x13   :  { %41 = dma.hbm_to_vmem [thread:$0]  %s1235_s1, 128, %s39_s16, [#allocation7]  }
  0x14   :  { %s869_s5 = scalar_lea.hbm %s1234_s0, 1024 }
  0x15   :  { %p870_p8 = scmp.ne.s32.totalorder %s1234_s0, %s869_s5  ;;  %p873_p9 = scmp.lt.u32.totalorder %s869_s5, %s1234_s0 }
  0x17   :  { %p875_p10 = pnand %p873_p9, %p870_p8 }
  0x19   :  { %878 = shalt.err (!%p875_p10)
}
  0x1a   :  { %s879_s10 = scalar_lea.vmem %s1001_s18, 1024  ;;  %p884_p12 = scmp.lt.s32.totalorder %s1001_s18, %s1001_s18 }
  0x1b   :  { %p880_p11 = scmp.ne.s32.totalorder %s1001_s18, %s879_s10  ;;  %p885_p13 = scmp.lt.s32.totalorder %s879_s10, %s879_s10 }
  0x1d   :  { %p886_p0 = por %p885_p13, %p884_p12 }
  0x1f   :  { %p887_p1 = pnand %p886_p0, %p880_p11 }
  0x21   :  { %890 = shalt.err (!%p887_p1)
}
  0x22   :  { %s967_s1 = smov 128   ;;  %s968_s11 = smov 8  }
  0x23   :  { %31 = dma.hbm_to_vmem [thread:$0]  %s1234_s0, 1024, %s1001_s18, [#allocation4], %s967_s1, %s967_s1, %s968_s11  }
  0x24   :  { %s969_s14 = smov [#allocation8]   ;;  %s891_s19 = scalar_lea.hbm %s1236_s2, 1024 }
  0x25   :  { %s47_s15 = sshll.u32 %s969_s14, 4  ;;  %p892_p2 = scmp.ne.s32.totalorder %s1236_s2, %s891_s19  ;;  %s48_s15 = int_to_ptr.vmem [resolvable:$true] %s47_s15 }
  0x26   :  { %p895_p3 = scmp.lt.u32.totalorder %s891_s19, %s1236_s2 }
  0x28   :  { %p897_p4 = pnand %p895_p3, %p892_p2 }
  0x2a   :  { %900 = shalt.err (!%p897_p4)
}
  0x2b   :  { %s901_s24 = scalar_lea.vmem %s48_s15, 1024  ;;  %p906_p6 = scmp.lt.s32.totalorder %s48_s15, %s48_s15 }
  0x2c   :  { %p902_p5 = scmp.ne.s32.totalorder %s48_s15, %s901_s24  ;;  %p907_p7 = scmp.lt.s32.totalorder %s901_s24, %s901_s24 }
  0x2e   :  { %p908_p8 = por %p907_p7, %p906_p6 }
  0x30   :  { %p909_p9 = pnand %p908_p8, %p902_p5 }
  0x32   :  { %912 = shalt.err (!%p909_p9)
}
  0x33   :  { %s970_s0 = smov 64   ;;  %s971_s18 = smov 4  }
  0x34   :  { %53 = dma.hbm_to_vmem [thread:$0]  %s1236_s2, 1024, %s48_s15, [#allocation7], %s970_s0, %s970_s0, %s971_s18  }
  0x35   :  { %957 = dma.done.wait [#allocation4], 1024  }
  0x36   :  { %958 = vsyncadd [#allocation4], 4294966272 }
  0x37   :  { %959 = dma.done.wait [#allocation7], 1152  }
  0x38   :  { %960 = vsyncadd [#allocation7], 4294966144  ;;  %v972_v0 = vmov 0.0   ;;  %vm973_vm0 = vmmov 0   ;;  %v1053_v1 = vld [vmem:[#allocation8] sm:$0xff]   ;;  %v1056_v2 = vld [vmem:[#allocation8 + $0x8] sm:$0xff]  }
  0x39   :  { %652 = vmatprep.subr.bf16.mxu0 %v972_v0  ;;  %668 = vmatprep.mubr.msk.bf16.mxu0 %vm973_vm0, %v972_v0  ;;  %v1062_v3 = vld [vmem:[#allocation8 + $0x10] sm:$0xff]   ;;  %v1068_v4 = vld [vmem:[#allocation8 + $0x18] sm:$0xff]   ;;  %v1074_v5 = vld [vmem:[#allocation8 + $0x20] sm:$0xff]   ;;  %s974_s2 = smov [#allocation9]   ;;  %s975_s28 = smov [#allocation10]  }
  0x3a   :  { %672 = vmatprep.subr.bf16.mxu1 %v972_v0  ;;  %688 = vmatprep.mubr.msk.bf16.mxu1 %vm973_vm0, %v972_v0  ;;  %v1080_v6 = vld [vmem:[#allocation8 + $0x28] sm:$0xff]   ;;  %v1086_v7 = vld [vmem:[#allocation8 + $0x30] sm:$0xff]   ;;  %v1092_v8 = vld [vmem:[#allocation8 + $0x38] sm:$0xff]   ;;  %s541_s27 = sshll.u32 %s974_s2, 4  ;;  %s554_s29 = sshll.u32 %s975_s28, 4  ;;  %s542_s27 = int_to_ptr.vmem [resolvable:$true] %s541_s27  ;;  %s555_s29 = int_to_ptr.vmem [resolvable:$true] %s554_s29 }
  0x3b   :  { %653 = vmatpush3.bf16.msra.mxu0 %v1053_v1  ;;  %673 = vmatpush3.bf16.msra.mxu1 %v1053_v1  ;;  %v76_v9 = vld [vmem:[#allocation6] sm:$0xff]  ;;  %v190_v21 = vld [vmem:[#allocation3 + $0x8] sm:$0xff]  ;;  %v238_v31 = vld [vmem:[#allocation3 + $0x10] sm:$0xff]  ;;  %s913_s30 = scalar_lea.vmem %s542_s27, 1024  ;;  %p918_p11 = scmp.lt.s32.totalorder %s542_s27, %s542_s27 }
  0x3c   :  { %654 = vmatprep.subr.bf16.mxu0 %v972_v0  ;;  %674 = vmatprep.subr.bf16.mxu1 %v972_v0  ;;  %v96_v10 = vpack.c.bf16 %v76_v9, %v76_v9  ;;  %v95_v11 = vld [vmem:[#allocation3] sm:$0xff]  ;;  %v286_v41 = vld [vmem:[#allocation3 + $0x18] sm:$0xff]  ;;  %v382_v61 = vld [vmem:[#allocation3 + $0x28] sm:$0xff]  ;;  %p914_p10 = scmp.ne.s32.totalorder %s542_s27, %s913_s30  ;;  %p919_p12 = scmp.lt.s32.totalorder %s913_s30, %s913_s30 }
  0x3d   :  { %v334_v51 = vld [vmem:[#allocation3 + $0x20] sm:$0xff] }
  0x3e   :  { %p920_p13 = por %p919_p12, %p918_p11 }
  0x3f   :  { %655 = vmatpush3.bf16.msra.mxu0 %v1056_v2  ;;  %675 = vmatpush3.bf16.msra.mxu1 %v1056_v2 }
  0x40   :  { %656 = vmatprep.subr.bf16.mxu0 %v972_v0  ;;  %676 = vmatprep.subr.bf16.mxu1 %v972_v0  ;;  %p921_p0 = pnand %p920_p13, %p914_p10 }
  0x43   :  { %657 = vmatpush3.bf16.msra.mxu0 %v1062_v3  ;;  %677 = vmatpush3.bf16.msra.mxu1 %v1062_v3 }
  0x44   :  { %658 = vmatprep.subr.bf16.mxu0 %v972_v0  ;;  %678 = vmatprep.subr.bf16.mxu1 %v972_v0 }
  0x47   :  { %659 = vmatpush3.bf16.msra.mxu0 %v1068_v4  ;;  %679 = vmatpush3.bf16.msra.mxu1 %v1068_v4 }
  0x48   :  { %660 = vmatprep.subr.bf16.mxu0 %v972_v0  ;;  %680 = vmatprep.subr.bf16.mxu1 %v972_v0 }
  0x4b   :  { %661 = vmatpush3.bf16.msra.mxu0 %v1074_v5  ;;  %681 = vmatpush3.bf16.msra.mxu1 %v1074_v5 }
  0x4c   :  { %662 = vmatprep.subr.bf16.mxu0 %v972_v0  ;;  %682 = vmatprep.subr.bf16.mxu1 %v972_v0 }
  0x4f   :  { %663 = vmatpush3.bf16.msra.mxu0 %v1080_v6  ;;  %683 = vmatpush3.bf16.msra.mxu1 %v1080_v6 }
  0x50   :  { %664 = vmatprep.subr.bf16.mxu0 %v972_v0  ;;  %684 = vmatprep.subr.bf16.mxu1 %v972_v0 }
  0x53   :  { %665 = vmatpush3.bf16.msra.mxu0 %v1086_v7  ;;  %685 = vmatpush3.bf16.msra.mxu1 %v1086_v7 }
  0x54   :  { %666 = vmatprep.subr.bf16.mxu0 %v972_v0  ;;  %686 = vmatprep.subr.bf16.mxu1 %v972_v0 }
  0x57   :  { %667 = vmatpush3.bf16.msra.mxu0 %v1092_v8  ;;  %687 = vmatpush3.bf16.msra.mxu1 %v1092_v8 }
  0x58   :  { %692 = vmatprep.subr.bf16.mxu0 %v972_v0  ;;  %712 = vmatprep.subr.bf16.mxu1 %v972_v0 }
  0x5a   :  { %669 = vmatmul.mubr.bf16.vlgmr.msra.gmra.mrb[0].mxu0 %v96_v10  ;;  %v430_v10 = vld [vmem:[#allocation3 + $0x30] sm:$0xff] }
  0x5b   :  { %693 = vmatpush3.bf16.msra.mxu0 %v1053_v1  ;;  %708 = vmatprep.mubr.msk.bf16.mxu0 %vm973_vm0, %v972_v0 }
  0x5c   :  { %694 = vmatprep.subr.bf16.mxu0 %v972_v0 }
  0x5f   :  { %695 = vmatpush3.bf16.msra.mxu0 %v1056_v2 }
  0x60   :  { %696 = vmatprep.subr.bf16.mxu0 %v972_v0 }
  0x63   :  { %697 = vmatpush3.bf16.msra.mxu0 %v1062_v3 }
  0x64   :  { %698 = vmatprep.subr.bf16.mxu0 %v972_v0 }
  0x67   :  { %699 = vmatpush3.bf16.msra.mxu0 %v1068_v4 }
  0x68   :  { %700 = vmatprep.subr.bf16.mxu0 %v972_v0 }
  0x6b   :  { %701 = vmatpush3.bf16.msra.mxu0 %v1074_v5 }
  0x6c   :  { %702 = vmatprep.subr.bf16.mxu0 %v972_v0 }
  0x6f   :  { %703 = vmatpush3.bf16.msra.mxu0 %v1080_v6 }
  0x70   :  { %704 = vmatprep.subr.bf16.mxu0 %v972_v0 }
  0x73   :  { %705 = vmatpush3.bf16.msra.mxu0 %v1086_v7 }
  0x74   :  { %706 = vmatprep.subr.bf16.mxu0 %v972_v0 }
  0x77   :  { %707 = vmatpush3.bf16.msra.mxu0 %v1092_v8 }
  0x78   :  { %732 = vmatprep.subr.bf16.mxu0 %v972_v0 }
 0x12d   :  { %v179_v12 = vpop.f32.mrb[0].mxu0 }
 0x12e   :  { %v180_v13 = vadd.f32 %v179_v12, %v95_v11  ;;  %v670_v14 = vpop.f32.mrb[1].mxu0 }
 0x12f   :  { %v182_v15 = vpop.f32.mrb[2].mxu0 }
 0x130   :  { %831 = vtanh.f32 %v180_v13  ;;  %v671_v16 = vpop.f32.mrb[3].mxu0 }
 0x13a   :  { %v832_v17 = vpop.eup %831 }
 0x13b   :  { %v186_v18 = vsub.f32 %v832_v17, %v76_v9  ;;  %v478_v17 = vld [vmem:[#allocation3 + $0x38] sm:$0xff] }
 0x13d   :  { %v187_v19 = vadd.f32 %v186_v18, %v76_v9 }
 0x13f   :  { %188 = vst [vmem:[#allocation9] sm:$0xff] %v187_v19  ;;  %v191_v20 = vpack.c.bf16 %v187_v19, %v187_v19 }
 0x141   :  { %689 = vmatmul.mubr.bf16.vlgmr.msra.gmra.mrb[0].mxu1 %v191_v20 }
 0x142   :  { %713 = vmatpush3.bf16.msra.mxu1 %v1053_v1  ;;  %728 = vmatprep.mubr.msk.bf16.mxu1 %vm973_vm0, %v972_v0 }
 0x143   :  { %714 = vmatprep.subr.bf16.mxu1 %v972_v0 }
 0x146   :  { %715 = vmatpush3.bf16.msra.mxu1 %v1056_v2 }
 0x147   :  { %716 = vmatprep.subr.bf16.mxu1 %v972_v0 }
 0x14a   :  { %717 = vmatpush3.bf16.msra.mxu1 %v1062_v3 }
 0x14b   :  { %718 = vmatprep.subr.bf16.mxu1 %v972_v0 }
 0x14e   :  { %719 = vmatpush3.bf16.msra.mxu1 %v1068_v4 }
 0x14f   :  { %720 = vmatprep.subr.bf16.mxu1 %v972_v0 }
 0x152   :  { %721 = vmatpush3.bf16.msra.mxu1 %v1074_v5 }
 0x153   :  { %722 = vmatprep.subr.bf16.mxu1 %v972_v0 }
 0x156   :  { %723 = vmatpush3.bf16.msra.mxu1 %v1080_v6 }
 0x157   :  { %724 = vmatprep.subr.bf16.mxu1 %v972_v0 }
 0x15a   :  { %725 = vmatpush3.bf16.msra.mxu1 %v1086_v7 }
 0x15b   :  { %726 = vmatprep.subr.bf16.mxu1 %v972_v0 }
 0x15e   :  { %727 = vmatpush3.bf16.msra.mxu1 %v1092_v8 }
 0x15f   :  { %752 = vmatprep.subr.bf16.mxu1 %v972_v0 }
 0x214   :  { %v226_v22 = vpop.f32.mrb[0].mxu1 }
 0x215   :  { %v227_v23 = vadd.f32 %v226_v22, %v190_v21  ;;  %v690_v24 = vpop.f32.mrb[1].mxu1 }
 0x216   :  { %v229_v25 = vpop.f32.mrb[2].mxu1 }
 0x217   :  { %833 = vtanh.f32 %v227_v23  ;;  %v691_v26 = vpop.f32.mrb[3].mxu1 }
 0x221   :  { %v834_v27 = vpop.eup %833 }
 0x222   :  { %v233_v28 = vsub.f32 %v834_v27, %v187_v19 }
 0x224   :  { %v234_v29 = vadd.f32 %v233_v28, %v187_v19 }
 0x226   :  { %236 = vst [vmem:[#allocation9 + $0x8] sm:$0xff] %v234_v29  ;;  %v239_v30 = vpack.c.bf16 %v234_v29, %v234_v29 }
 0x228   :  { %709 = vmatmul.mubr.bf16.vlgmr.msra.gmra.mrb[4].mxu0 %v239_v30 }
 0x229   :  { %733 = vmatpush3.bf16.msra.mxu0 %v1053_v1  ;;  %748 = vmatprep.mubr.msk.bf16.mxu0 %vm973_vm0, %v972_v0 }
 0x22a   :  { %734 = vmatprep.subr.bf16.mxu0 %v972_v0 }
 0x22d   :  { %735 = vmatpush3.bf16.msra.mxu0 %v1056_v2 }
 0x22e   :  { %736 = vmatprep.subr.bf16.mxu0 %v972_v0 }
 0x231   :  { %737 = vmatpush3.bf16.msra.mxu0 %v1062_v3 }
 0x232   :  { %738 = vmatprep.subr.bf16.mxu0 %v972_v0 }
 0x235   :  { %739 = vmatpush3.bf16.msra.mxu0 %v1068_v4 }
 0x236   :  { %740 = vmatprep.subr.bf16.mxu0 %v972_v0 }
 0x239   :  { %741 = vmatpush3.bf16.msra.mxu0 %v1074_v5 }
 0x23a   :  { %742 = vmatprep.subr.bf16.mxu0 %v972_v0 }
 0x23d   :  { %743 = vmatpush3.bf16.msra.mxu0 %v1080_v6 }
 0x23e   :  { %744 = vmatprep.subr.bf16.mxu0 %v972_v0 }
 0x241   :  { %745 = vmatpush3.bf16.msra.mxu0 %v1086_v7 }
 0x242   :  { %746 = vmatprep.subr.bf16.mxu0 %v972_v0 }
 0x245   :  { %747 = vmatpush3.bf16.msra.mxu0 %v1092_v8 }
 0x246   :  { %772 = vmatprep.subr.bf16.mxu0 %v972_v0 }
 0x2fb   :  { %v274_v32 = vpop.f32.mrb[4].mxu0 }
 0x2fc   :  { %v275_v33 = vadd.f32 %v274_v32, %v238_v31  ;;  %v710_v34 = vpop.f32.mrb[5].mxu0 }
 0x2fd   :  { %v277_v35 = vpop.f32.mrb[6].mxu0 }
 0x2fe   :  { %835 = vtanh.f32 %v275_v33  ;;  %v711_v36 = vpop.f32.mrb[7].mxu0 }
 0x308   :  { %v836_v37 = vpop.eup %835 }
 0x309   :  { %v281_v38 = vsub.f32 %v836_v37, %v234_v29 }
 0x30b   :  { %v282_v39 = vadd.f32 %v281_v38, %v234_v29 }
 0x30d   :  { %284 = vst [vmem:[#allocation9 + $0x10] sm:$0xff] %v282_v39  ;;  %v287_v40 = vpack.c.bf16 %v282_v39, %v282_v39 }
 0x30f   :  { %729 = vmatmul.mubr.bf16.vlgmr.msra.gmra.mrb[4].mxu1 %v287_v40 }
 0x310   :  { %753 = vmatpush3.bf16.msra.mxu1 %v1053_v1  ;;  %768 = vmatprep.mubr.msk.bf16.mxu1 %vm973_vm0, %v972_v0 }
 0x311   :  { %754 = vmatprep.subr.bf16.mxu1 %v972_v0 }
 0x314   :  { %755 = vmatpush3.bf16.msra.mxu1 %v1056_v2 }
 0x315   :  { %756 = vmatprep.subr.bf16.mxu1 %v972_v0 }
 0x318   :  { %757 = vmatpush3.bf16.msra.mxu1 %v1062_v3 }
 0x319   :  { %758 = vmatprep.subr.bf16.mxu1 %v972_v0 }
 0x31c   :  { %759 = vmatpush3.bf16.msra.mxu1 %v1068_v4 }
 0x31d   :  { %760 = vmatprep.subr.bf16.mxu1 %v972_v0 }
 0x320   :  { %761 = vmatpush3.bf16.msra.mxu1 %v1074_v5 }
 0x321   :  { %762 = vmatprep.subr.bf16.mxu1 %v972_v0 }
 0x324   :  { %763 = vmatpush3.bf16.msra.mxu1 %v1080_v6 }
 0x325   :  { %764 = vmatprep.subr.bf16.mxu1 %v972_v0 }
 0x328   :  { %765 = vmatpush3.bf16.msra.mxu1 %v1086_v7 }
 0x329   :  { %766 = vmatprep.subr.bf16.mxu1 %v972_v0 }
 0x32c   :  { %767 = vmatpush3.bf16.msra.mxu1 %v1092_v8 }
 0x32d   :  { %792 = vmatprep.subr.bf16.mxu1 %v972_v0 }
 0x3e2   :  { %v322_v42 = vpop.f32.mrb[4].mxu1 }
 0x3e3   :  { %v323_v43 = vadd.f32 %v322_v42, %v286_v41  ;;  %v730_v44 = vpop.f32.mrb[5].mxu1 }
 0x3e4   :  { %v325_v45 = vpop.f32.mrb[6].mxu1 }
 0x3e5   :  { %837 = vtanh.f32 %v323_v43  ;;  %v731_v46 = vpop.f32.mrb[7].mxu1 }
 0x3ef   :  { %v838_v47 = vpop.eup %837 }
 0x3f0   :  { %v329_v48 = vsub.f32 %v838_v47, %v282_v39 }
 0x3f2   :  { %v330_v49 = vadd.f32 %v329_v48, %v282_v39 }
 0x3f4   :  { %332 = vst [vmem:[#allocation9 + $0x18] sm:$0xff] %v330_v49  ;;  %v335_v50 = vpack.c.bf16 %v330_v49, %v330_v49 }
 0x3f6   :  { %749 = vmatmul.mubr.bf16.vlgmr.msra.gmra.mrb[8].mxu0 %v335_v50 }
 0x3f7   :  { %773 = vmatpush3.bf16.msra.mxu0 %v1053_v1  ;;  %788 = vmatprep.mubr.msk.bf16.mxu0 %vm973_vm0, %v972_v0 }
 0x3f8   :  { %774 = vmatprep.subr.bf16.mxu0 %v972_v0 }
 0x3fb   :  { %775 = vmatpush3.bf16.msra.mxu0 %v1056_v2 }
 0x3fc   :  { %776 = vmatprep.subr.bf16.mxu0 %v972_v0 }
 0x3ff   :  { %777 = vmatpush3.bf16.msra.mxu0 %v1062_v3 }
 0x400   :  { %778 = vmatprep.subr.bf16.mxu0 %v972_v0 }
 0x403   :  { %779 = vmatpush3.bf16.msra.mxu0 %v1068_v4 }
 0x404   :  { %780 = vmatprep.subr.bf16.mxu0 %v972_v0 }
 0x407   :  { %781 = vmatpush3.bf16.msra.mxu0 %v1074_v5 }
 0x408   :  { %782 = vmatprep.subr.bf16.mxu0 %v972_v0 }
 0x40b   :  { %783 = vmatpush3.bf16.msra.mxu0 %v1080_v6 }
 0x40c   :  { %784 = vmatprep.subr.bf16.mxu0 %v972_v0 }
 0x40f   :  { %785 = vmatpush3.bf16.msra.mxu0 %v1086_v7 }
 0x410   :  { %786 = vmatprep.subr.bf16.mxu0 %v972_v0 }
 0x413   :  { %787 = vmatpush3.bf16.msra.mxu0 %v1092_v8 }
 0x4c9   :  { %v370_v52 = vpop.f32.mrb[8].mxu0 }
 0x4ca   :  { %v371_v53 = vadd.f32 %v370_v52, %v334_v51  ;;  %v750_v54 = vpop.f32.mrb[9].mxu0 }
 0x4cb   :  { %v373_v55 = vpop.f32.mrb[10].mxu0 }
 0x4cc   :  { %839 = vtanh.f32 %v371_v53  ;;  %v751_v56 = vpop.f32.mrb[11].mxu0 }
 0x4d6   :  { %v840_v57 = vpop.eup %839 }
 0x4d7   :  { %v377_v58 = vsub.f32 %v840_v57, %v330_v49 }
 0x4d9   :  { %v378_v59 = vadd.f32 %v377_v58, %v330_v49 }
 0x4db   :  { %380 = vst [vmem:[#allocation9 + $0x20] sm:$0xff] %v378_v59  ;;  %v383_v60 = vpack.c.bf16 %v378_v59, %v378_v59 }
 0x4dd   :  { %769 = vmatmul.mubr.bf16.vlgmr.msra.gmra.mrb[8].mxu1 %v383_v60 }
 0x4de   :  { %793 = vmatpush3.bf16.msra.mxu1 %v1053_v1  ;;  %808 = vmatprep.mubr.msk.bf16.mxu1 %vm973_vm0, %v972_v0 }
 0x4df   :  { %794 = vmatprep.subr.bf16.mxu1 %v972_v0 }
 0x4e2   :  { %795 = vmatpush3.bf16.msra.mxu1 %v1056_v2 }
 0x4e3   :  { %796 = vmatprep.subr.bf16.mxu1 %v972_v0 }
 0x4e6   :  { %797 = vmatpush3.bf16.msra.mxu1 %v1062_v3 }
 0x4e7   :  { %798 = vmatprep.subr.bf16.mxu1 %v972_v0 }
 0x4ea   :  { %799 = vmatpush3.bf16.msra.mxu1 %v1068_v4 }
 0x4eb   :  { %800 = vmatprep.subr.bf16.mxu1 %v972_v0 }
 0x4ee   :  { %801 = vmatpush3.bf16.msra.mxu1 %v1074_v5 }
 0x4ef   :  { %802 = vmatprep.subr.bf16.mxu1 %v972_v0 }
 0x4f2   :  { %803 = vmatpush3.bf16.msra.mxu1 %v1080_v6 }
 0x4f3   :  { %804 = vmatprep.subr.bf16.mxu1 %v972_v0 }
 0x4f6   :  { %805 = vmatpush3.bf16.msra.mxu1 %v1086_v7 }
 0x4f7   :  { %806 = vmatprep.subr.bf16.mxu1 %v972_v0 }
 0x4fa   :  { %807 = vmatpush3.bf16.msra.mxu1 %v1092_v8 }
 0x5b0   :  { %v418_v62 = vpop.f32.mrb[8].mxu1 }
 0x5b1   :  { %v419_v63 = vadd.f32 %v418_v62, %v382_v61  ;;  %v770_v1 = vpop.f32.mrb[9].mxu1 }
 0x5b2   :  { %v421_v2 = vpop.f32.mrb[10].mxu1 }
 0x5b3   :  { %841 = vtanh.f32 %v419_v63  ;;  %v771_v3 = vpop.f32.mrb[11].mxu1 }
 0x5bd   :  { %v842_v4 = vpop.eup %841 }
 0x5be   :  { %v425_v5 = vsub.f32 %v842_v4, %v378_v59 }
 0x5c0   :  { %v426_v9 = vadd.f32 %v425_v5, %v378_v59 }
 0x5c2   :  { %428 = vst [vmem:[#allocation9 + $0x28] sm:$0xff] %v426_v9  ;;  %v431_v6 = vpack.c.bf16 %v426_v9, %v426_v9 }
 0x5c4   :  { %789 = vmatmul.mubr.bf16.vlgmr.msra.gmra.mrb[12].mxu0 %v431_v6 }
 0x697   :  { %v466_v11 = vpop.f32.mrb[12].mxu0 }
 0x698   :  { %v467_v7 = vadd.f32 %v466_v11, %v430_v10  ;;  %v790_v12 = vpop.f32.mrb[13].mxu0 }
 0x699   :  { %v469_v0 = vpop.f32.mrb[14].mxu0 }
 0x69a   :  { %843 = vtanh.f32 %v467_v7  ;;  %v791_v8 = vpop.f32.mrb[15].mxu0 }
 0x6a4   :  { %v844_v13 = vpop.eup %843 }
 0x6a5   :  { %v473_v14 = vsub.f32 %v844_v13, %v426_v9 }
 0x6a7   :  { %v474_v15 = vadd.f32 %v473_v14, %v426_v9 }
 0x6a9   :  { %476 = vst [vmem:[#allocation9 + $0x30] sm:$0xff] %v474_v15  ;;  %v479_v16 = vpack.c.bf16 %v474_v15, %v474_v15 }
 0x6ab   :  { %809 = vmatmul.mubr.bf16.vlgmr.msra.gmra.mrb[12].mxu1 %v479_v16 }
 0x77e   :  { %v514_v18 = vpop.f32.mrb[12].mxu1 }
 0x77f   :  { %v515_v19 = vadd.f32 %v514_v18, %v478_v17  ;;  %v810_v20 = vpop.f32.mrb[13].mxu1 }
 0x780   :  { %v517_v21 = vpop.f32.mrb[14].mxu1 }
 0x781   :  { %845 = vtanh.f32 %v515_v19  ;;  %v811_v22 = vpop.f32.mrb[15].mxu1 }
 0x78b   :  { %v846_v23 = vpop.eup %845 }
 0x78c   :  { %v521_v24 = vsub.f32 %v846_v23, %v474_v15 }
 0x78e   :  { %v522_v25 = vadd.f32 %v521_v24, %v474_v15 }
 0x790   :  { %524 = vst [vmem:[#allocation9 + $0x38] sm:$0xff] %v522_v25  ;;  %529 = vst [vmem:[#allocation10] sm:$0xff] %v522_v25 }
 0x791   :  { %924 = shalt.err (!%p921_p0)
}
 0x792   :  { %s925_s7 = scalar_lea.hbm %s1237_s3, 1024 }
 0x793   :  { %p926_p1 = scmp.ne.s32.totalorder %s1237_s3, %s925_s7  ;;  %p929_p2 = scmp.lt.u32.totalorder %s925_s7, %s1237_s3 }
 0x795   :  { %p931_p3 = pnand %p929_p2, %p926_p1 }
 0x797   :  { %934 = shalt.err (!%p931_p3)
}
 0x798   :  { %547 = dma.vmem_to_hbm [thread:$0]  %s542_s27, 1024, %s1237_s3, [#allocation5], %s967_s1, %s967_s1, %s968_s11  }
 0x799   :  { %s935_s15 = scalar_lea.vmem %s555_s29, 128  ;;  %p940_p5 = scmp.lt.s32.totalorder %s555_s29, %s555_s29 }
 0x79a   :  { %p936_p4 = scmp.ne.s32.totalorder %s555_s29, %s935_s15  ;;  %p941_p6 = scmp.lt.s32.totalorder %s935_s15, %s935_s15 }
 0x79c   :  { %p942_p7 = por %p941_p6, %p940_p5 }
 0x79e   :  { %p943_p8 = pnand %p942_p7, %p936_p4 }
 0x7a0   :  { %946 = shalt.err (!%p943_p8)
}
 0x7a1   :  { %s947_s19 = scalar_lea.hbm %s1238_s4, 128 }
 0x7a2   :  { %p948_p9 = scmp.ne.s32.totalorder %s1238_s4, %s947_s19  ;;  %p951_p10 = scmp.lt.u32.totalorder %s947_s19, %s1238_s4 }
 0x7a4   :  { %p953_p11 = pnand %p951_p10, %p948_p9 }
 0x7a6   :  { %956 = shalt.err (!%p953_p11)
}
 0x7a7   :  { %557 = dma.vmem_to_hbm [thread:$0]  %s555_s29, 128, %s1238_s4, [#allocation11]  }
 0x7a8   :  { %961 = dma.done.wait [#allocation5], 1024  }
 0x7a9   :  { %962 = vsyncadd [#allocation5], 4294966272 }
 0x7aa   :  { %963 = dma.done.wait [#allocation11], 128  }
 0x7ab   :  { %964 = vsyncadd [#allocation11], 4294967168 }
 0x7ac   :  { %564 = vsyncpa [#allocation4], 1 }
 0x7ad   :  { %565 = vsyncpa [#allocation7], 1 }
 0x7ae   :  { %566 = vsyncpa [#allocation5], 1 }
 0x7af   :  { %567 = vsyncpa [#allocation11], 1 }

</bundles_post_ra>
